<compile_context>
chip_gen: v5e
topology: v5e:2x2
jax: 0.10.0
libtpu: 0.0.40
codegen_flags: <defaults>
</compile_context>

<pallas_src>
import functools

import jax
import jax.numpy as jnp
from jax.experimental import pallas as pl
from jax.experimental.pallas import tpu as pltpu


def _unsqueeze_kernel(x_ref, o_ref, *, factor):
    # x_ref: (TR * factor, TL)  ->  o_ref: (TR, TL * factor)
    x = x_ref[...]
    rows_in, tl = x.shape
    tr = rows_in // factor
    y = x.reshape(tr, factor, tl)          # (TR, f, TL)
    y = jnp.swapaxes(y, 1, 2)              # (TR, TL, f)   XLU relayout
    o_ref[...] = y.reshape(tr, tl * factor)


def _squeeze_kernel(x_ref, o_ref, *, factor):
    # x_ref: (TR, TL)  ->  o_ref: (TR * factor, TL // factor)
    x = x_ref[...]
    tr, tl = x.shape
    y = x.reshape(tr, tl // factor, factor)    # (TR, TL/f, f)
    y = jnp.swapaxes(y, 1, 2)                  # (TR, f, TL/f) XLU relayout
    o_ref[...] = y.reshape(tr * factor, tl // factor)


def _pick_tile(total, align, max_tile):
    """Largest multiple of `align` that divides `total` and is <= max_tile.

    Falls back to `total` itself (a block equal to the full dim is always a
    legal, mask-free BlockSpec even when unaligned)."""
    total = int(total)
    align = int(align)
    max_tile = max(int(max_tile), align)
    if total <= max_tile:
        return total
    if total % align != 0:
        return total                 # cannot tile mask-free; take the full dim
    best = align
    t = align
    while t <= min(total, max_tile):
        if total % t == 0:
            best = t
        t += align
    return best


def unsqueeze_layer(x, factor, reverse=False, *, tile_budget_bytes=16 * 2**20):
    """Pallas implementation of UnSqueezeLayer.forward.

    forward (reverse=False): unsqueeze1d  (B, C, L) -> (B, C // factor, L * factor)
    reverse=True           : squeeze1d    (B, C, L) -> (B, C * factor, L // factor)
    """
    if factor == 1:
        return x
    B, C, L = x.shape
    itemsize = jnp.dtype(x.dtype).itemsize
    sub = max(8, 32 // itemsize)           # sublane multiple: 8 f32, 16 bf16, 32 int8
    # per-tile element budget: in-tile + out-tile, each double buffered
    budget_elems = max(1, tile_budget_bytes // (4 * itemsize))

    rows_in, l_in = B * C, L

    if reverse:
        assert L % factor == 0, "L modulo factor is not 0"
        rows_out, l_out = B * C * factor, L // factor
        out_chan = C * factor
        align_l = 128 * factor                       # output lanes stay >=128-dense
        tl_cap = max(align_l, budget_elems // sub)   # prefer full-L (contiguous DMA)
        tl_in = _pick_tile(l_in, align_l, tl_cap)
        tr_in = _pick_tile(rows_in, sub, max(sub, budget_elems // tl_in))
        in_block = (tr_in, tl_in)
        out_block = (tr_in * factor, tl_in // factor)
        kernel = functools.partial(_squeeze_kernel, factor=factor)
    else:
        assert C % factor == 0, "C modulo factor is not 0"
        rows_out, l_out = (B * C) // factor, L * factor
        out_chan = C // factor
        tl_cap = max(128, budget_elems // (sub * factor))
        tl_in = _pick_tile(l_in, 128, tl_cap)        # prefer full-L (contiguous DMA)
        tr_out = _pick_tile(rows_out, sub,
                            max(sub, budget_elems // (tl_in * factor)))
        in_block = (tr_out * factor, tl_in)
        out_block = (tr_out, tl_in * factor)
        kernel = functools.partial(_unsqueeze_kernel, factor=factor)

    grid = (rows_in // in_block[0], l_in // in_block[1])

    tile_bytes = in_block[0] * in_block[1] * itemsize   # == out tile bytes
    # 2x double-buffered in + out plus headroom for relayout temporaries
    vmem_limit = int(min(max(8 * tile_bytes, 16 * 2**20), 48 * 2**20))

    x2d = x.reshape(rows_in, l_in)
    out2d = pl.pallas_call(
        kernel,
        out_shape=jax.ShapeDtypeStruct((rows_out, l_out), x.dtype),
        grid_spec=pl.GridSpec(
            grid=grid,
            in_specs=[pl.BlockSpec(in_block, lambda r, t: (r, t))],
            out_specs=pl.BlockSpec(out_block, lambda r, t: (r, t)),
        ),
        compiler_params=pltpu.CompilerParams(
            dimension_semantics=("parallel", "parallel"),
            vmem_limit_bytes=vmem_limit,
        ),
        cost_estimate=pl.CostEstimate(
            flops=0,
            transcendentals=0,
            bytes_accessed=2 * rows_in * l_in * itemsize,
        ),
    )(x2d)
    return out2d.reshape(B, out_chan, l_out)


# ---------------- pure-JAX references ----------------
def _unsqueeze1d_ref(x, factor):
    B, C, L = x.shape
    y = jnp.transpose(x.reshape(B, C // factor, factor, L), (0, 1, 3, 2))
    return y.reshape(B, C // factor, L * factor)


def _squeeze1d_ref(x, factor):
    B, C, L = x.shape
    y = jnp.transpose(x.reshape(B, C, L // factor, factor), (0, 1, 3, 2))
    return y.reshape(B, C * factor, L // factor)


if __name__ == "__main__":
    key = jax.random.PRNGKey(0)

    # --- test 1: small shapes matching the module convention (B, C, L) ---
    B, C, L, factor = 2, 8, 16, 4
    x = jax.random.normal(key, (B, C, L), dtype=jnp.float32)

    out_fwd = jax.block_until_ready(unsqueeze_layer(x, factor, reverse=False))
    assert out_fwd.shape == (B, C // factor, L * factor)
    assert jnp.allclose(out_fwd, _unsqueeze1d_ref(x, factor))

    out_rev = jax.block_until_ready(unsqueeze_layer(out_fwd, factor, reverse=True))
    assert out_rev.shape == (B, C, L)
    assert jnp.allclose(out_rev, _squeeze1d_ref(out_fwd, factor))
    assert jnp.allclose(out_rev, x)          # round trip recovers the input

    # --- test 2: force the multi-tile (grid > 1 along L) path with a tiny budget ---
    k2 = jax.random.PRNGKey(1)
    B2, C2, L2, f2 = 2, 8, 1024, 4
    x2 = jax.random.normal(k2, (B2, C2, L2), dtype=jnp.float32)

    y2 = jax.block_until_ready(
        unsqueeze_layer(x2, f2, reverse=False, tile_budget_bytes=64 * 1024))
    assert y2.shape == (B2, C2 // f2, L2 * f2)
    assert jnp.allclose(y2, _unsqueeze1d_ref(x2, f2))

    z2 = jax.block_until_ready(
        unsqueeze_layer(y2, f2, reverse=True, tile_budget_bytes=64 * 1024))
    assert jnp.allclose(z2, _squeeze1d_ref(y2, f2))
    assert jnp.allclose(z2, x2)

    # --- test 3: bf16 (different sublane packing) ---
    k3 = jax.random.PRNGKey(2)
    x3 = jax.random.normal(k3, (2, 16, 256), dtype=jnp.bfloat16)
    y3 = jax.block_until_ready(unsqueeze_layer(x3, 2, reverse=False))
    assert y3.shape == (2, 8, 512)
    assert jnp.array_equal(y3, _unsqueeze1d_ref(x3, 2))   # pure permutation -> exact

    print("KERNEL_OK")
</pallas_src>

<mosaic_0001>
module attributes {stable_mosaic.version = 11 : i64} {
  func.func @_unsqueeze_kernel(%arg0: i32, %arg1: i32, %arg2: memref<16x16xf32, #tpu.memory_space<vmem>>, %arg3: memref<4x64xf32, #tpu.memory_space<vmem>>) attributes {dimension_semantics = [#tpu.dimension_semantics<parallel>, #tpu.dimension_semantics<parallel>], iteration_bounds = array<i64: 1, 1>, scalar_prefetch = 0 : i64, scratch_operands = 0 : i64, tpu.core_type = #tpu.core_type<tc>, window_params = [{transform_indices = @transform_0, window_bounds = array<i64: 16, 16>}, {transform_indices = @transform_1, window_bounds = array<i64: 4, 64>}]} {
    %c0 = arith.constant 0 : index
    %c0_0 = arith.constant 0 : index
    %0 = vector.load %arg2[%c0, %c0_0] : memref<16x16xf32, #tpu.memory_space<vmem>>, vector<16x16xf32>
    %1 = vector.shape_cast %0 : vector<16x16xf32> to vector<4x4x16xf32>
    %2 = tpu.transpose %1, [0, 2, 1] : vector<4x4x16xf32> -> vector<4x16x4xf32>
    %3 = vector.shape_cast %2 : vector<4x16x4xf32> to vector<4x64xf32>
    %c0_1 = arith.constant 0 : index
    %c0_2 = arith.constant 0 : index
    %4 = vector.load %arg3[%c0_1, %c0_2] : memref<4x64xf32, #tpu.memory_space<vmem>>, vector<4x64xf32>
    tpu.vector_store %arg3[%c0_1, %c0_2], %3 {strides = array<i32>} : memref<4x64xf32, #tpu.memory_space<vmem>>, vector<4x64xf32>,
    return
  }
  func.func @transform_0(%arg0: i32, %arg1: i32) -> (i32, i32) {
    %c0_i32 = arith.constant 0 : i32
    return %arg0, %arg1 : i32, i32
  }
  func.func @transform_1(%arg0: i32, %arg1: i32) -> (i32, i32) {
    %c0_i32 = arith.constant 0 : i32
    return %arg0, %arg1 : i32, i32
  }
}

</mosaic_0001>

<bundles_post_ra>
// kernel: tpu_custom_call.1
= control target key start
LH: loop header
LB: loop body
LE: loop exit
PB: predicated region body
PF: predicated region fallthrough
CT: control target
= control target key end

     0   :  { %6 = vsyncpa [#allocation3], 0  ;;  %s546_s0 = inlined_call_operand.hbm [shape: f32[16,16], index: 0, kind: input, shape index: {}]   ;;  %s547_s1 = inlined_call_operand.hbm [shape: f32[4,64], index: 1, kind: output, shape index: {}]  }
   0x1   :  { %7 = vsyncpa [#allocation4], 0  ;;  %s12_s8 = sshll.u32 %s546_s0, 4  ;;  %s456_s9 = smov [#allocation2]   ;;  %s13_s8 = int_to_ptr.hbm [resolvable:$true] %s12_s8 }
   0x2   :  { %s14_s10 = sshll.u32 %s456_s9, 4  ;;  %s457_s11 = smov 128   ;;  %s15_s10 = int_to_ptr.vmem [resolvable:$true] %s14_s10 }
   0x3   :  { %s458_s12 = smov 8  }
   0x4   :  { %20 = dma.hbm_to_vmem [thread:$0]  %s13_s8, 256, %s15_s10, [#allocation3], %s457_s11, %s457_s11, %s458_s12  }
   0x5   :  { %452 = dma.done.wait [#allocation3], 256  }
   0x6   :  { %453 = vsyncadd [#allocation3], 4294967040  ;;  %v26_v0 = vld [vmem:[#allocation2 + $0x8] sm:$0xff]  ;;  %v25_v1 = vld [vmem:[#allocation2] sm:$0xff]  ;;  %v459_v6 = vmov 1983009808  }
   0x7   :  { %97 = vxpose.xlu1.b32.start.end [1/1] (short) (narrow) %v26_v0, 16  ;;  %33 = vxpose.xlu0.b32.start.end [1/1] (short) (narrow) %v25_v1, 16  ;;  %v30_v2 = vrot.slane %v26_v0, 4  ;;  %v29_v3 = vrot.slane %v25_v1, 4  ;;  %v167_v7 = vunpack.c.l.s4 %v459_v6  ;;  %vm162_vm0 = vcmask 1047556   ;;  %s461_s0 = smov 16  }
   0x8   :  { %v460_v16 = vmov 1934713408   ;;  %s462_s13 = smov 20   ;;  %s463_s14 = smov 12   ;;  %vm334_vm1 = vcmask 31744   ;;  %vm336_vm2 = vcmask 64512  }
   0x9   :  { %v497_v13 = vunpack.c.0.s8 %v167_v7  ;;  %v191_v17 = vunpack.c.l.s4 %v460_v16  ;;  %s464_s15 = smov 4   ;;  %s465_s16 = smov 24   ;;  %vm338_vm3 = vcmask 97280   ;;  %vm340_vm4 = vcmask 130048  }
   0xa   :  { %s466_s17 = smov 28   ;;  %s467_s18 = smov 40   ;;  %vm342_vm5 = vcmask 162816   ;;  %vm344_vm6 = vcmask 195584   ;;  %vm346_vm7 = vcmask 228352   ;;  %vm348_vm8 = vcmask 261120  }
   0xb   :  { %v504_v26 = vunpack.c.0.s8 %v191_v17  ;;  %s468_s19 = smov 32   ;;  %s469_s20 = smov 48   ;;  %vm350_vm9 = vcmask 293888   ;;  %vm352_vm10 = vcmask 326656   ;;  %vm354_vm11 = vcmask 359424  }
   0xc   :  { %s470_s21 = smov 44   ;;  %s471_s22 = smov 36   ;;  %vm356_vm12 = vcmask 392192   ;;  %vm358_vm13 = vcmask 424960   ;;  %vm360_vm14 = vcmask 457728   ;;  %vm362_vm15 = vcmask 490496  }
   0xd   :  { %s472_s23 = smov 52   ;;  %s473_s24 = smov 56  }
   0xe   :  { %s474_s25 = smov 60   ;;  %s475_s26 = smov [#allocation5]  }
   0xf   :  { %s371_s27 = sshll.u32 %s475_s26, 4  ;;  %s373_s30 = sshll.u32 %s547_s1, 4  ;;  %s372_s27 = int_to_ptr.vmem [resolvable:$true] %s371_s27  ;;  %s374_s30 = int_to_ptr.hbm [resolvable:$true] %s373_s30 }
  0x17   :  { %129 = vxpose.xlu1.b32.start.end [1/1] (short) (narrow) %v30_v2, 16  ;;  %65 = vxpose.xlu0.b32.start.end [1/1] (short) (narrow) %v29_v3, 16 }
  0xab   :  { %v113_v4 = vpop.trf.xlu1  ;;  %v49_v5 = vpop.trf.xlu0 }
  0xac   :  { %v161_v10 = vrot.slane %v113_v4, 4  ;;  %v164_v15 = vrot.slane %v49_v5, 4 }
  0xae   :  { %v163_v14 = vsel %vm162_vm0, %v161_v10, %v49_v5  ;;  %v165_v23 = vsel %vm162_vm0, %v113_v4, %v164_v15 }
  0xaf   :  { %v169_v18 = vperm.slane %v163_v14, %v497_v13  ;;  %v173_v30 = vperm.slane %v165_v23, %v497_v13 }
  0xb1   :  { %v188_v27 = vrot.slane %v169_v18, 4  ;;  %v200_v61 = vrot.slane %v173_v30, 4 }
  0xb3   :  { %v490_v8 = vpop.trf.xlu1  ;;  %v492_v9 = vpop.trf.xlu0 }
  0xb4   :  { %v220_v11 = vrot.slane %v492_v9, 4  ;;  %v218_v63 = vrot.slane %v490_v8, 4 }
  0xb6   :  { %v221_v12 = vsel %vm162_vm0, %v490_v8, %v220_v11  ;;  %v219_v2 = vsel %vm162_vm0, %v218_v63, %v492_v9 }
  0xb7   :  { %v229_v36 = vperm.slane %v221_v12, %v497_v13  ;;  %v225_v5 = vperm.slane %v219_v2, %v497_v13 }
  0xb9   :  { %v256_v45 = vrot.slane %v229_v36, 4  ;;  %v244_v8 = vrot.slane %v225_v5, 4 }
  0xbb   :  { %v145_v19 = vpop.trf.xlu1  ;;  %v81_v20 = vpop.trf.xlu0 }
  0xbc   :  { %v174_v21 = vrot.slane %v145_v19, 4  ;;  %v176_v22 = vrot.slane %v81_v20, 4 }
  0xbe   :  { %v175_v24 = vsel %vm162_vm0, %v174_v21, %v81_v20  ;;  %v177_v25 = vsel %vm162_vm0, %v145_v19, %v176_v22 }
  0xbf   :  { %v181_v28 = vperm.slane %v175_v24, %v497_v13  ;;  %v185_v29 = vperm.slane %v177_v25, %v497_v13 }
  0xc1   :  { %v198_v31 = vrot.slane %v185_v29, 4  ;;  %v189_v32 = vsel %vm162_vm0, %v181_v28, %v188_v27  ;;  %v186_v37 = vrot.slane %v181_v28, 4  ;;  %v201_v62 = vsel %vm162_vm0, %v185_v29, %v200_v61 }
  0xc2   :  { %v197_v33 = vperm.slane %v189_v32, %v504_v26  ;;  %v209_v0 = vperm.slane %v201_v62, %v504_v26 }
  0xc3   :  { %v82_v34 = vpop.trf.xlu0  ;;  %v199_v35 = vsel %vm162_vm0, %v198_v31, %v173_v30  ;;  %v146_v40 = vpop.trf.xlu1  ;;  %v187_v47 = vsel %vm162_vm0, %v186_v37, %v169_v18 }
  0xc4   :  { %v232_v38 = vrot.slane %v82_v34, 4  ;;  %279 = vrot.lane.b32.xlu2 %v197_v33, %s458_s12  ;;  %v205_v39 = vperm.slane %v199_v35, %v504_v26  ;;  %v212_v44 = vrot.slane %v197_v33, 4  ;;  %v193_v51 = vperm.slane %v187_v47, %v504_v26 }
  0xc5   :  { %v230_v1 = vrot.slane %v146_v40, 4  ;;  %v216_v3 = vrot.slane %v209_v0, 4 }
  0xc6   :  { %v233_v41 = vsel %vm162_vm0, %v146_v40, %v232_v38  ;;  %287 = vrot.lane.b32.xlu0 %v205_v39, %s461_s0  ;;  %v214_v42 = vrot.slane %v205_v39, 4  ;;  %v213_v50 = vsel %vm162_vm0, 0.0, %v212_v44  ;;  %v210_v57 = vrot.slane %v193_v51, 4 }
  0xc7   :  { %v241_v43 = vperm.slane %v233_v41, %v497_v13  ;;  %v231_v4 = vsel %vm162_vm0, %v230_v1, %v82_v34  ;;  %v217_v7 = vsel %vm162_vm0, 0.0, %v216_v3 }
  0xc8   :  { %v215_v46 = vsel %vm162_vm0, 0.0, %v214_v42  ;;  %v211_v60 = vsel %vm162_vm0, 0.0, %v210_v57  ;;  %v237_v6 = vperm.slane %v231_v4, %v497_v13 }
  0xc9   :  { %v254_v48 = vrot.slane %v241_v43, 4  ;;  %291 = vrot.lane.b32.xlu1 %v215_v46, %s462_s13  ;;  %v257_v49 = vsel %vm162_vm0, %v241_v43, %v256_v45 }
  0xca   :  { %v265_v53 = vperm.slane %v257_v49, %v504_v26  ;;  %v245_v10 = vsel %vm162_vm0, %v237_v6, %v244_v8  ;;  %v242_v12 = vrot.slane %v237_v6, 4 }
  0xcb   :  { %v255_v52 = vsel %vm162_vm0, %v254_v48, %v229_v36  ;;  %v253_v11 = vperm.slane %v245_v10, %v504_v26 }
  0xcc   :  { %283 = vrot.lane.b32.xlu2 %v213_v50, %s463_s14  ;;  %v261_v54 = vperm.slane %v255_v52, %v504_v26  ;;  %v272_v55 = vrot.slane %v265_v53, 4  ;;  %v243_v9 = vsel %vm162_vm0, %v242_v12, %v225_v5 }
  0xcd   :  { %v249_v14 = vperm.slane %v243_v9, %v504_v26  ;;  %v268_v13 = vrot.slane %v253_v11, 4 }
  0xce   :  { %v270_v56 = vrot.slane %v261_v54, 4  ;;  %v273_v58 = vsel %vm162_vm0, 0.0, %v272_v55 }
  0xcf   :  { %v269_v15 = vsel %vm162_vm0, 0.0, %v268_v13  ;;  %v266_v16 = vrot.slane %v249_v14, 4 }
  0xd0   :  { %v271_v59 = vsel %vm162_vm0, 0.0, %v270_v56 }
  0xd1   :  { %v267_v17 = vsel %vm162_vm0, 0.0, %v266_v16  ;;  %vm364_vm0 = vcmask 519168  }
  0xd4   :  { %275 = vrot.lane.b32.xlu2 %v211_v60, %s464_s15 }
  0xdc   :  { %295 = vrot.lane.b32.xlu2 %v209_v0, %s465_s16 }
  0xe4   :  { %299 = vrot.lane.b32.xlu2 %v217_v7, %s466_s17 }
  0xec   :  { %311 = vrot.lane.b32.xlu2 %v253_v11, %s467_s18 }
  0xf4   :  { %303 = vrot.lane.b32.xlu2 %v249_v14, %s468_s19 }
  0xfc   :  { %319 = vrot.lane.b32.xlu2 %v261_v54, %s469_s20 }
 0x104   :  { %315 = vrot.lane.b32.xlu2 %v269_v15, %s470_s21 }
 0x10c   :  { %307 = vrot.lane.b32.xlu2 %v267_v17, %s471_s22 }
 0x114   :  { %323 = vrot.lane.b32.xlu2 %v271_v59, %s472_s23 }
 0x11c   :  { %327 = vrot.lane.b32.xlu2 %v265_v53, %s473_s24 }
 0x11e   :  { %v280_v18 = vpop.permute.xlu2 %279 }
 0x124   :  { %331 = vrot.lane.b32.xlu2 %v273_v58, %s474_s25 }
 0x126   :  { %v284_v19 = vpop.permute.xlu2 %283 }
 0x12e   :  { %v276_v20 = vpop.permute.xlu2 %275 }
 0x12f   :  { %v335_v21 = vsel %vm334_vm1, %v193_v51, %v276_v20 }
 0x130   :  { %v337_v22 = vsel %vm336_vm2, %v335_v21, %v280_v18 }
 0x131   :  { %v339_v23 = vsel %vm338_vm3, %v337_v22, %v284_v19 }
 0x136   :  { %v296_v24 = vpop.permute.xlu2 %295 }
 0x138   :  { %v288_v31 = vpop.permute.xlu0 %287 }
 0x139   :  { %v341_v33 = vsel %vm340_vm4, %v339_v23, %v288_v31 }
 0x13b   :  { %v292_v32 = vpop.permute.xlu1 %291 }
 0x13c   :  { %v343_v34 = vsel %vm342_vm5, %v341_v33, %v292_v32 }
 0x13d   :  { %v345_v35 = vsel %vm344_vm6, %v343_v34, %v296_v24 }
 0x13e   :  { %v300_v25 = vpop.permute.xlu2 %299 }
 0x13f   :  { %v347_v37 = vsel %vm346_vm7, %v345_v35, %v300_v25 }
 0x146   :  { %v312_v26 = vpop.permute.xlu2 %311 }
 0x14e   :  { %v304_v27 = vpop.permute.xlu2 %303 }
 0x14f   :  { %v349_v38 = vsel %vm348_vm8, %v347_v37, %v304_v27 }
 0x156   :  { %v320_v28 = vpop.permute.xlu2 %319 }
 0x15e   :  { %v316_v29 = vpop.permute.xlu2 %315 }
 0x166   :  { %v308_v30 = vpop.permute.xlu2 %307 }
 0x167   :  { %v351_v39 = vsel %vm350_vm9, %v349_v38, %v308_v30 }
 0x168   :  { %v353_v40 = vsel %vm352_vm10, %v351_v39, %v312_v26 }
 0x169   :  { %v355_v42 = vsel %vm354_vm11, %v353_v40, %v316_v29 }
 0x16a   :  { %v357_v43 = vsel %vm356_vm12, %v355_v42, %v320_v28 }
 0x16e   :  { %v324_v36 = vpop.permute.xlu2 %323 }
 0x16f   :  { %v359_v44 = vsel %vm358_vm13, %v357_v43, %v324_v36 }
 0x176   :  { %v328_v41 = vpop.permute.xlu2 %327 }
 0x177   :  { %v361_v45 = vsel %vm360_vm14, %v359_v44, %v328_v41 }
 0x17e   :  { %v332_v46 = vpop.permute.xlu2 %331 }
 0x17f   :  { %v363_v47 = vsel %vm362_vm15, %v361_v45, %v332_v46 }
 0x180   :  { %365 = vst.msk [vmem:[#allocation5] sm:$0xf] %vm364_vm0, %v363_v47 }
 0x181   :  { %376 = dma.vmem_to_hbm [thread:$0]  %s372_s27, 64, %s374_s30, [#allocation4]  }
 0x182   :  { %454 = dma.done.wait [#allocation4], 64  }
 0x183   :  { %455 = vsyncadd [#allocation4], 4294967232 }
 0x184   :  { %381 = vsyncpa [#allocation3], 1 }
 0x185   :  { %382 = vsyncpa [#allocation4], 1 }

</bundles_post_ra>
